<compile_context>
chip_gen: v7x
topology: tpu7x:2x2x1
jax: 0.10.0
libtpu: 0.0.40
codegen_flags: <defaults>
</compile_context>

<pallas_src>
import jax
import jax.numpy as jnp
from jax.experimental import pallas as pl
from jax.experimental.pallas import tpu as pltpu

D = 128          # hidden size fixed by the module
NUM_LAYERS = 5


def mlp_kernel(x_ref, w_ref, b_ref, o_ref):
    # x_ref: (tile_b, D) f32   w_ref: (5, D, D) bf16   b_ref: (5, 1, D) f32
    h = x_ref[...]

    def dense(h, layer, relu):
        # bf16 inputs, f32 accumulation on the MXU.
        y = jnp.dot(h.astype(jnp.bfloat16), w_ref[layer],
                    preferred_element_type=jnp.float32)
        y = y + b_ref[layer]            # (1, D) broadcasts over rows (f32)
        if relu:
            y = jnp.maximum(y, 0.0)     # VPU; co-issues with MXU work
        return y

    for layer in range(NUM_LAYERS - 1):
        h = dense(h, layer, relu=True)
    y = dense(h, NUM_LAYERS - 1, relu=False)   # final layer: no activation
    o_ref[...] = y.astype(o_ref.dtype)


def _choose_tile_b(b_padded, cap=1024):
    """Batch-tile policy.

    * b_padded <= cap: a single full-size grid step. v5e/v6e have one
      TensorCore, so splitting small batches only adds ~0.35 us/step overhead
      and under-fills the MXU M dimension.
    * b_padded > cap: largest multiple-of-8 divisor of b_padded that is <= cap
      (>= 2 steps), which keeps per-step tiles large and lets v7x shard the
      "parallel" grid axis across its two TensorCores.
    """
    if b_padded <= cap:
        return b_padded
    best = 8
    t = 8
    while t <= cap:
        if b_padded % t == 0:
            best = t
        t += 8
    return best


def mlp_forward(x, w_packed, b_packed, *, tile_b=None):
    """x: [B, 128] f32. w_packed: [5, 128, 128] (in, out). b_packed: [5, 1, 128]."""
    B, Din = x.shape
    assert Din == D
    assert w_packed.shape == (NUM_LAYERS, D, D)
    assert b_packed.shape == (NUM_LAYERS, 1, D)

    # Pad batch up to a multiple of 8 so the (tile_b, 128) block is
    # (8,128)-aligned; slice the padding back off at the end.
    # TODO(synk): for ragged B in the memory-bound regime, a masked tail store
    # would avoid this wrapper-side HBM copy of x.
    b_padded = ((B + 7) // 8) * 8
    if b_padded != B:
        x = jnp.pad(x, ((0, b_padded - B), (0, 0)))

    if tile_b is None:
        tile_b = _choose_tile_b(b_padded)
    assert tile_b % 8 == 0 and b_padded % tile_b == 0

    # Weights go in as bf16 (halves the weight DMA and feeds the MXU directly);
    # biases stay f32 for an exact f32 bias add.
    w_bf16 = w_packed.astype(jnp.bfloat16)
    b_f32 = b_packed.astype(jnp.float32)

    resident = pl.BlockSpec(memory_space=pltpu.MemorySpace.VMEM)

    out = pl.pallas_call(
        mlp_kernel,
        out_shape=jax.ShapeDtypeStruct((b_padded, D), x.dtype),
        grid_spec=pltpu.PrefetchScalarGridSpec(
            num_scalar_prefetch=0,
            grid=(b_padded // tile_b,),
            in_specs=[
                pl.BlockSpec((tile_b, D), lambda i: (i, 0)),  # x tile
                resident,                                     # packed weights
                resident,                                     # packed biases
            ],
            out_specs=pl.BlockSpec((tile_b, D), lambda i: (i, 0)),
        ),
        compiler_params=pltpu.CompilerParams(
            dimension_semantics=("parallel",),
            vmem_limit_bytes=32 * 1024 * 1024,
        ),
    )(x, w_bf16, b_f32)

    if b_padded != B:
        out = out[:B]
    return out


def init_params(key):
    """Deterministic init mimicking PyTorch Linear default (uniform +-1/sqrt(in)).

    Returns packed arrays: W [5, D, D] (stored as [in, out]) and b [5, 1, D].
    """
    bound = 1.0 / jnp.sqrt(jnp.float32(D))
    ws, bs = [], []
    for _ in range(NUM_LAYERS):
        kw, kb, key = jax.random.split(key, 3)
        ws.append(jax.random.uniform(kw, (D, D), jnp.float32, -bound, bound))
        bs.append(jax.random.uniform(kb, (1, D), jnp.float32, -bound, bound))
    return jnp.stack(ws), jnp.stack(bs)


def reference_forward(x, w_packed, b_packed):
    """Pure-f32 reference matching the PyTorch module (eval mode)."""
    h = x
    for i in range(NUM_LAYERS):
        h = h @ w_packed[i] + b_packed[i]
        if i < NUM_LAYERS - 1:
            h = jnp.maximum(h, 0.0)
    return h


if __name__ == "__main__":
    key = jax.random.PRNGKey(0)
    kx, kp = jax.random.split(key)

    B = 64  # small batch; tile chooser gives a single full-size grid step
    x = jax.random.normal(kx, (B, D), jnp.float32)
    w_packed, b_packed = init_params(kp)

    out = mlp_forward(x, w_packed, b_packed)
    out = jax.block_until_ready(out)

    ref = reference_forward(x, w_packed, b_packed)
    assert out.shape == (B, D)
    # bf16 matmul inputs (f32 accumulation) vs a pure-f32 reference: relaxed
    # tolerance appropriate for a 5-layer bf16 MLP.
    assert jnp.allclose(out, ref, atol=2e-2, rtol=2e-2), "mismatch vs reference"

    print("KERNEL_OK")
</pallas_src>

<mosaic_0001>
module attributes {stable_mosaic.version = 11 : i64} {
  func.func @mlp_kernel(%arg0: i32, %arg1: memref<64x128xf32, #tpu.memory_space<vmem>>, %arg2: memref<5x128x128xbf16, #tpu.memory_space<vmem>>, %arg3: memref<5x1x128xf32, #tpu.memory_space<vmem>>, %arg4: memref<64x128xf32, #tpu.memory_space<vmem>>) attributes {dimension_semantics = [#tpu.dimension_semantics<parallel>], iteration_bounds = array<i64: 1>, scalar_prefetch = 0 : i64, scratch_operands = 0 : i64, tpu.core_type = #tpu.core_type<tc>, window_params = [{transform_indices = @transform_0, window_bounds = array<i64: 64, 128>}, {pipeline_mode = #tpu.pipeline_mode<synchronous>, transform_indices = @transform_1, window_bounds = array<i64: 5, 128, 128>}, {pipeline_mode = #tpu.pipeline_mode<synchronous>, transform_indices = @transform_2, window_bounds = array<i64: 5, 1, 128>}, {transform_indices = @transform_3, window_bounds = array<i64: 64, 128>}]} {
    %c0 = arith.constant 0 : index
    %c0_0 = arith.constant 0 : index
    %0 = vector.load %arg1[%c0, %c0_0] : memref<64x128xf32, #tpu.memory_space<vmem>>, vector<64x128xf32>
    %1 = arith.truncf %0 : vector<64x128xf32> to vector<64x128xbf16>
    %c0_1 = arith.constant 0 : index
    %c0_2 = arith.constant 0 : index
    %c0_3 = arith.constant 0 : index
    %2 = vector.load %arg2[%c0_1, %c0_2, %c0_3] : memref<5x128x128xbf16, #tpu.memory_space<vmem>>, vector<1x128x128xbf16>
    %3 = vector.shape_cast %2 : vector<1x128x128xbf16> to vector<128x128xbf16>
    %cst = arith.constant dense<0.000000e+00> : vector<64x128xf32>
    %4 = tpu.matmul %1, %3, %cst {dimension_numbers = #tpu.dot_dimension_numbers<[1], [0], [0], [1], [0, 0, 1, 1], [], []>} : vector<64x128xbf16>, vector<128x128xbf16>, vector<64x128xf32> -> vector<64x128xf32>
    %c0_4 = arith.constant 0 : index
    %c0_5 = arith.constant 0 : index
    %c0_6 = arith.constant 0 : index
    %5 = vector.load %arg3[%c0_4, %c0_5, %c0_6] : memref<5x1x128xf32, #tpu.memory_space<vmem>>, vector<1x1x128xf32>
    %6 = vector.shape_cast %5 : vector<1x1x128xf32> to vector<1x128xf32>
    %7 = vector.broadcast %6 : vector<1x128xf32> to vector<64x128xf32>
    %8 = arith.addf %4, %7 : vector<64x128xf32>
    %cst_7 = arith.constant 0.000000e+00 : f32
    %9 = vector.broadcast %cst_7 : f32 to vector<64x128xf32>
    %10 = arith.maximumf %8, %9 : vector<64x128xf32>
    %11 = arith.truncf %10 : vector<64x128xf32> to vector<64x128xbf16>
    %c1 = arith.constant 1 : index
    %c0_8 = arith.constant 0 : index
    %c0_9 = arith.constant 0 : index
    %12 = vector.load %arg2[%c1, %c0_8, %c0_9] : memref<5x128x128xbf16, #tpu.memory_space<vmem>>, vector<1x128x128xbf16>
    %13 = vector.shape_cast %12 : vector<1x128x128xbf16> to vector<128x128xbf16>
    %cst_10 = arith.constant dense<0.000000e+00> : vector<64x128xf32>
    %14 = tpu.matmul %11, %13, %cst_10 {dimension_numbers = #tpu.dot_dimension_numbers<[1], [0], [0], [1], [0, 0, 1, 1], [], []>} : vector<64x128xbf16>, vector<128x128xbf16>, vector<64x128xf32> -> vector<64x128xf32>
    %c1_11 = arith.constant 1 : index
    %c0_12 = arith.constant 0 : index
    %c0_13 = arith.constant 0 : index
    %15 = vector.load %arg3[%c1_11, %c0_12, %c0_13] : memref<5x1x128xf32, #tpu.memory_space<vmem>>, vector<1x1x128xf32>
    %16 = vector.shape_cast %15 : vector<1x1x128xf32> to vector<1x128xf32>
    %17 = vector.broadcast %16 : vector<1x128xf32> to vector<64x128xf32>
    %18 = arith.addf %14, %17 : vector<64x128xf32>
    %cst_14 = arith.constant 0.000000e+00 : f32
    %19 = vector.broadcast %cst_14 : f32 to vector<64x128xf32>
    %20 = arith.maximumf %18, %19 : vector<64x128xf32>
    %21 = arith.truncf %20 : vector<64x128xf32> to vector<64x128xbf16>
    %c2 = arith.constant 2 : index
    %c0_15 = arith.constant 0 : index
    %c0_16 = arith.constant 0 : index
    %22 = vector.load %arg2[%c2, %c0_15, %c0_16] : memref<5x128x128xbf16, #tpu.memory_space<vmem>>, vector<1x128x128xbf16>
    %23 = vector.shape_cast %22 : vector<1x128x128xbf16> to vector<128x128xbf16>
    %cst_17 = arith.constant dense<0.000000e+00> : vector<64x128xf32>
    %24 = tpu.matmul %21, %23, %cst_17 {dimension_numbers = #tpu.dot_dimension_numbers<[1], [0], [0], [1], [0, 0, 1, 1], [], []>} : vector<64x128xbf16>, vector<128x128xbf16>, vector<64x128xf32> -> vector<64x128xf32>
    %c2_18 = arith.constant 2 : index
    %c0_19 = arith.constant 0 : index
    %c0_20 = arith.constant 0 : index
    %25 = vector.load %arg3[%c2_18, %c0_19, %c0_20] : memref<5x1x128xf32, #tpu.memory_space<vmem>>, vector<1x1x128xf32>
    %26 = vector.shape_cast %25 : vector<1x1x128xf32> to vector<1x128xf32>
    %27 = vector.broadcast %26 : vector<1x128xf32> to vector<64x128xf32>
    %28 = arith.addf %24, %27 : vector<64x128xf32>
    %cst_21 = arith.constant 0.000000e+00 : f32
    %29 = vector.broadcast %cst_21 : f32 to vector<64x128xf32>
    %30 = arith.maximumf %28, %29 : vector<64x128xf32>
    %31 = arith.truncf %30 : vector<64x128xf32> to vector<64x128xbf16>
    %c3 = arith.constant 3 : index
    %c0_22 = arith.constant 0 : index
    %c0_23 = arith.constant 0 : index
    %32 = vector.load %arg2[%c3, %c0_22, %c0_23] : memref<5x128x128xbf16, #tpu.memory_space<vmem>>, vector<1x128x128xbf16>
    %33 = vector.shape_cast %32 : vector<1x128x128xbf16> to vector<128x128xbf16>
    %cst_24 = arith.constant dense<0.000000e+00> : vector<64x128xf32>
    %34 = tpu.matmul %31, %33, %cst_24 {dimension_numbers = #tpu.dot_dimension_numbers<[1], [0], [0], [1], [0, 0, 1, 1], [], []>} : vector<64x128xbf16>, vector<128x128xbf16>, vector<64x128xf32> -> vector<64x128xf32>
    %c3_25 = arith.constant 3 : index
    %c0_26 = arith.constant 0 : index
    %c0_27 = arith.constant 0 : index
    %35 = vector.load %arg3[%c3_25, %c0_26, %c0_27] : memref<5x1x128xf32, #tpu.memory_space<vmem>>, vector<1x1x128xf32>
    %36 = vector.shape_cast %35 : vector<1x1x128xf32> to vector<1x128xf32>
    %37 = vector.broadcast %36 : vector<1x128xf32> to vector<64x128xf32>
    %38 = arith.addf %34, %37 : vector<64x128xf32>
    %cst_28 = arith.constant 0.000000e+00 : f32
    %39 = vector.broadcast %cst_28 : f32 to vector<64x128xf32>
    %40 = arith.maximumf %38, %39 : vector<64x128xf32>
    %41 = arith.truncf %40 : vector<64x128xf32> to vector<64x128xbf16>
    %c4 = arith.constant 4 : index
    %c0_29 = arith.constant 0 : index
    %c0_30 = arith.constant 0 : index
    %42 = vector.load %arg2[%c4, %c0_29, %c0_30] : memref<5x128x128xbf16, #tpu.memory_space<vmem>>, vector<1x128x128xbf16>
    %43 = vector.shape_cast %42 : vector<1x128x128xbf16> to vector<128x128xbf16>
    %cst_31 = arith.constant dense<0.000000e+00> : vector<64x128xf32>
    %44 = tpu.matmul %41, %43, %cst_31 {dimension_numbers = #tpu.dot_dimension_numbers<[1], [0], [0], [1], [0, 0, 1, 1], [], []>} : vector<64x128xbf16>, vector<128x128xbf16>, vector<64x128xf32> -> vector<64x128xf32>
    %c4_32 = arith.constant 4 : index
    %c0_33 = arith.constant 0 : index
    %c0_34 = arith.constant 0 : index
    %45 = vector.load %arg3[%c4_32, %c0_33, %c0_34] : memref<5x1x128xf32, #tpu.memory_space<vmem>>, vector<1x1x128xf32>
    %46 = vector.shape_cast %45 : vector<1x1x128xf32> to vector<1x128xf32>
    %47 = vector.broadcast %46 : vector<1x128xf32> to vector<64x128xf32>
    %48 = arith.addf %44, %47 : vector<64x128xf32>
    %c0_35 = arith.constant 0 : index
    %c0_36 = arith.constant 0 : index
    %49 = vector.load %arg4[%c0_35, %c0_36] : memref<64x128xf32, #tpu.memory_space<vmem>>, vector<64x128xf32>
    tpu.vector_store %arg4[%c0_35, %c0_36], %48 {strides = array<i32>} : memref<64x128xf32, #tpu.memory_space<vmem>>, vector<64x128xf32>,
    return
  }
  func.func @transform_0(%arg0: i32) -> (i32, i32) {
    %c0_i32 = arith.constant 0 : i32
    %c0_i32_0 = arith.constant 0 : i32
    return %arg0, %c0_i32 : i32, i32
  }
  func.func @transform_1(%arg0: i32) -> (i32, i32, i32) {
    %c0_i32 = arith.constant 0 : i32
    %c0_i32_0 = arith.constant 0 : i32
    %c0_i32_1 = arith.constant 0 : i32
    %c0_i32_2 = arith.constant 0 : i32
    return %c0_i32, %c0_i32_0, %c0_i32_1 : i32, i32, i32
  }
  func.func @transform_2(%arg0: i32) -> (i32, i32, i32) {
    %c0_i32 = arith.constant 0 : i32
    %c0_i32_0 = arith.constant 0 : i32
    %c0_i32_1 = arith.constant 0 : i32
    %c0_i32_2 = arith.constant 0 : i32
    return %c0_i32, %c0_i32_0, %c0_i32_1 : i32, i32, i32
  }
  func.func @transform_3(%arg0: i32) -> (i32, i32) {
    %c0_i32 = arith.constant 0 : i32
    %c0_i32_0 = arith.constant 0 : i32
    return %arg0, %c0_i32 : i32, i32
  }
}

</mosaic_0001>

<bundles_post_ra>
// kernel: tpu_custom_call.1
= control target key start
LH: loop header
LB: loop body
LE: loop exit
PB: predicated region body
PF: predicated region fallthrough
CT: control target
= control target key end

     0   :  { %8 = vsyncpa [#allocation3], 0  ;;  %s1266_s0 = inlined_call_operand.hbm [shape: f32[64,128], index: 0, kind: input, shape index: {}]   ;;  %s1267_s1 = inlined_call_operand.hbm [shape: bf16[5,128,128], index: 1, kind: input, shape index: {}]   ;;  %s1268_s2 = inlined_call_operand.vmem [shape: f32[5,1,128], index: 2, kind: input, shape index: {}]   ;;  %s1269_s3 = inlined_call_operand.hbm [shape: f32[64,128], index: 3, kind: output, shape index: {}]  }
   0x1   :  { %9 = vsyncpa [#allocation6], 0 }
   0x2   :  { %10 = vsyncpa [#allocation4], 0  ;;  %s1182_s12 = smov [#allocation2]   ;;  %s1110_s16 = scalar_lea.hbm %s1266_s0, 1024 }
   0x3   :  { %s16_s13 = sshll.u32 %s1182_s12, 4  ;;  %p1111_p0 = scmp.ne.s32.totalorder %s1266_s0, %s1110_s16  ;;  %s17_s13 = int_to_ptr.vmem [resolvable:$true] %s16_s13 }
   0x4   :  { %p1114_p1 = scmp.lt.u32.totalorder %s1110_s16, %s1266_s0 }
   0x6   :  { %p1116_p2 = pnand %p1114_p1, %p1111_p0 }
   0x8   :  { %1119 = shalt.err (!%p1116_p2)
}
   0x9   :  { %s1120_s21 = scalar_lea.vmem %s17_s13, 1024  ;;  %p1125_p4 = scmp.lt.s32.totalorder %s17_s13, %s17_s13 }
   0xa   :  { %p1121_p3 = scmp.ne.s32.totalorder %s17_s13, %s1120_s21  ;;  %p1126_p5 = scmp.lt.s32.totalorder %s1120_s21, %s1120_s21 }
   0xc   :  { %p1127_p6 = por %p1126_p5, %p1125_p4 }
   0xe   :  { %p1128_p7 = pnand %p1127_p6, %p1121_p3 }
  0x10   :  { %1131 = shalt.err (!%p1128_p7)
}
  0x11   :  { %s1183_s22 = smov 128   ;;  %s1184_s23 = smov 8  }
  0x12   :  { %22 = dma.hbm_to_vmem [thread:$0]  %s1266_s0, 1024, %s17_s13, [#allocation3], %s1183_s22, %s1183_s22, %s1184_s23  }
  0x13   :  { %s1185_s26 = smov [#allocation5]   ;;  %s1132_s30 = scalar_lea.hbm %s1267_s1, 5120 }
  0x14   :  { %s28_s27 = sshll.u32 %s1185_s26, 4  ;;  %p1133_p8 = scmp.ne.s32.totalorder %s1267_s1, %s1132_s30  ;;  %s29_s27 = int_to_ptr.vmem [resolvable:$true] %s28_s27 }
  0x15   :  { %p1136_p9 = scmp.lt.u32.totalorder %s1132_s30, %s1267_s1 }
  0x17   :  { %p1138_p10 = pnand %p1136_p9, %p1133_p8 }
  0x19   :  { %1141 = shalt.err (!%p1138_p10)
}
  0x1a   :  { %s1142_s8 = scalar_lea.vmem %s29_s27, 5120  ;;  %p1147_p12 = scmp.lt.s32.totalorder %s29_s27, %s29_s27 }
  0x1b   :  { %p1143_p11 = scmp.ne.s32.totalorder %s29_s27, %s1142_s8  ;;  %p1148_p13 = scmp.lt.s32.totalorder %s1142_s8, %s1142_s8 }
  0x1d   :  { %p1149_p0 = por %p1148_p13, %p1147_p12 }
  0x1f   :  { %p1150_p1 = pnand %p1149_p0, %p1143_p11 }
  0x21   :  { %1153 = shalt.err (!%p1150_p1)
}
  0x22   :  { %s1186_s0 = smov 64   ;;  %s1187_s9 = smov 4  }
  0x23   :  { %34 = dma.hbm_to_vmem [thread:$0]  %s1267_s1, 5120, %s29_s27, [#allocation6], %s1186_s0, %s1186_s0, %s1187_s9  }
  0x24   :  { %1176 = dma.done.wait [#allocation3], 1024  }
  0x25   :  { %1177 = vsyncadd [#allocation3], 4294966272 }
  0x26   :  { %1178 = dma.done.wait [#allocation6], 5120  }
  0x27   :  { %1179 = vsyncadd [#allocation6], 4294962176  ;;  %v1070_v0 = vld [vmem:[#allocation5] sm:$0xff]   ;;  %v1071_v1 = vld [vmem:[#allocation5 + $0x8] sm:$0xff]   ;;  %s1188_s21 = smov [#allocation7]  }
  0x28   :  { %927 = vmatprep.subr.bf16.mxu0 %v1070_v0  ;;  %v1072_v2 = vld [vmem:[#allocation5 + $0x10] sm:$0xff]   ;;  %v1073_v3 = vld [vmem:[#allocation5 + $0x18] sm:$0xff]   ;;  %v44_v4 = vld [vmem:[#allocation2] sm:$0xff]  ;;  %s805_s24 = sshll.u32 %s1188_s21, 4  ;;  %s806_s24 = int_to_ptr.vmem [resolvable:$true] %s805_s24 }
  0x29   :  { %928 = vmatpush3.bf16.msra.mxu0 %v1070_v0  ;;  %v45_v5 = vld [vmem:[#allocation2 + $0x8] sm:$0xff]  ;;  %v1074_v7 = vld [vmem:[#allocation5 + $0x20] sm:$0xff]   ;;  %v1080_v10 = vld [vmem:[#allocation5 + $0x50] sm:$0xff]   ;;  %p1159_p3 = scmp.lt.s32.totalorder %s806_s24, %s806_s24 }
  0x2a   :  { %929 = vmatprep.subr.bf16.mxu0 %v1071_v1  ;;  %v52_v6 = vpack.c.bf16 %v45_v5, %v44_v4  ;;  %v1078_v8 = vld [vmem:[#allocation5 + $0x40] sm:$0xff]   ;;  %v1079_v9 = vld [vmem:[#allocation5 + $0x48] sm:$0xff]   ;;  %v1081_v12 = vld [vmem:[#allocation5 + $0x58] sm:$0xff]  }
  0x2b   :  { %951 = vmatprep.subr.bf16.mxu1 %v1078_v8  ;;  %v1075_v11 = vld [vmem:[#allocation5 + $0x28] sm:$0xff]   ;;  %v1076_v13 = vld [vmem:[#allocation5 + $0x30] sm:$0xff]   ;;  %v1082_v14 = vld [vmem:[#allocation5 + $0x60] sm:$0xff]  }
  0x2c   :  { %943 = vmatprep.mubr.bf16.mxu0 %v52_v6  ;;  %952 = vmatpush3.bf16.msra.mxu1 %v1078_v8  ;;  %v1077_v15 = vld [vmem:[#allocation5 + $0x38] sm:$0xff]   ;;  %v46_v16 = vld [vmem:[#allocation2 + $0x10] sm:$0xff]  ;;  %v1083_v18 = vld [vmem:[#allocation5 + $0x68] sm:$0xff]  }
  0x2d   :  { %930 = vmatpush3.bf16.msra.mxu0 %v1071_v1  ;;  %953 = vmatprep.subr.bf16.mxu1 %v1079_v9  ;;  %v47_v17 = vld [vmem:[#allocation2 + $0x18] sm:$0xff]  ;;  %v48_v19 = vld [vmem:[#allocation2 + $0x20] sm:$0xff]  ;;  %v49_v20 = vld [vmem:[#allocation2 + $0x28] sm:$0xff] }
  0x2e   :  { %931 = vmatprep.subr.bf16.mxu0 %v1072_v2  ;;  %v53_v21 = vpack.c.bf16 %v47_v17, %v46_v16  ;;  %v54_v22 = vpack.c.bf16 %v49_v20, %v48_v19  ;;  %v50_v23 = vld [vmem:[#allocation2 + $0x30] sm:$0xff]  ;;  %v51_v24 = vld [vmem:[#allocation2 + $0x38] sm:$0xff]  ;;  %v1086_v28 = vld [vmem:[#allocation5 + $0x80] sm:$0xff]  }
  0x2f   :  { %v55_v25 = vpack.c.bf16 %v51_v24, %v50_v23  ;;  %v1084_v26 = vld [vmem:[#allocation5 + $0x70] sm:$0xff]   ;;  %v1085_v27 = vld [vmem:[#allocation5 + $0x78] sm:$0xff]   ;;  %v1087_v29 = vld [vmem:[#allocation5 + $0x88] sm:$0xff]  }
  0x30   :  { %954 = vmatpush3.bf16.msra.mxu1 %v1079_v9  ;;  %v1088_v30 = vld [vmem:[#allocation5 + $0x90] sm:$0xff]   ;;  %v1089_v31 = vld [vmem:[#allocation5 + $0x98] sm:$0xff]   ;;  %v1090_v32 = vld [vmem:[#allocation5 + $0xa0] sm:$0xff]  }
  0x31   :  { %932 = vmatpush3.bf16.msra.mxu0 %v1072_v2  ;;  %955 = vmatprep.subr.bf16.mxu1 %v1080_v10  ;;  %v1091_v33 = vld [vmem:[#allocation5 + $0xa8] sm:$0xff]   ;;  %v818_v34 = vld [vmem:[%s1268_s2] ss:$0 sm:$0xff]  ;;  %v1092_v63 = vld [vmem:[#allocation5 + $0xb0] sm:$0xff]  }
  0x32   :  { %933 = vmatprep.subr.bf16.mxu0 %v1073_v3  ;;  %v1093_v0 = vld [vmem:[#allocation5 + $0xb8] sm:$0xff]   ;;  %v1094_v1 = vld [vmem:[#allocation5 + $0xc0] sm:$0xff]   ;;  %v1095_v2 = vld [vmem:[#allocation5 + $0xc8] sm:$0xff]  }
  0x33   :  { %v1097_v4 = vld [vmem:[#allocation5 + $0xd8] sm:$0xff]   ;;  %v1098_v5 = vld [vmem:[#allocation5 + $0xe0] sm:$0xff]   ;;  %v1099_v6 = vld [vmem:[#allocation5 + $0xe8] sm:$0xff]  }
  0x34   :  { %956 = vmatpush3.bf16.msra.mxu1 %v1080_v10 }
  0x35   :  { %934 = vmatpush3.bf16.msra.mxu0 %v1073_v3  ;;  %957 = vmatprep.subr.bf16.mxu1 %v1081_v12  ;;  %v1096_v3 = vld [vmem:[#allocation5 + $0xd0] sm:$0xff]  }
  0x36   :  { %935 = vmatprep.subr.bf16.mxu0 %v1074_v7 }
  0x38   :  { %958 = vmatpush3.bf16.msra.mxu1 %v1081_v12 }
  0x39   :  { %936 = vmatpush3.bf16.msra.mxu0 %v1074_v7  ;;  %959 = vmatprep.subr.bf16.mxu1 %v1082_v14  ;;  %v828_v7 = vld [vmem:[%s1268_s2 + $0x1] ss:$0 sm:$0xff] }
  0x3a   :  { %937 = vmatprep.subr.bf16.mxu0 %v1075_v11 }
  0x3c   :  { %960 = vmatpush3.bf16.msra.mxu1 %v1082_v14 }
  0x3d   :  { %938 = vmatpush3.bf16.msra.mxu0 %v1075_v11  ;;  %961 = vmatprep.subr.bf16.mxu1 %v1083_v18 }
  0x3e   :  { %939 = vmatprep.subr.bf16.mxu0 %v1076_v13 }
  0x40   :  { %962 = vmatpush3.bf16.msra.mxu1 %v1083_v18 }
  0x41   :  { %940 = vmatpush3.bf16.msra.mxu0 %v1076_v13  ;;  %963 = vmatprep.subr.bf16.mxu1 %v1084_v26 }
  0x42   :  { %941 = vmatprep.subr.bf16.mxu0 %v1077_v15 }
  0x44   :  { %964 = vmatpush3.bf16.msra.mxu1 %v1084_v26 }
  0x45   :  { %942 = vmatpush3.bf16.msra.mxu0 %v1077_v15  ;;  %965 = vmatprep.subr.bf16.mxu1 %v1085_v27 }
  0x46   :  { %975 = vmatprep.subr.bf16.mxu0 %v1086_v28 }
  0x48   :  { %944 = vmatmul.mubr.bf16.vlgmr.msra.gmra.mrb[0].mxu0 %v53_v21  ;;  %966 = vmatpush3.bf16.msra.mxu1 %v1085_v27 }
  0x49   :  { %947 = vmatprep.mubr.bf16.mxu0 %v54_v22  ;;  %976 = vmatpush3.bf16.msra.mxu0 %v1086_v28 }
  0x4a   :  { %977 = vmatprep.subr.bf16.mxu0 %v1087_v29  ;;  %999 = vmatprep.subr.bf16.mxu1 %v1094_v1 }
  0x4d   :  { %978 = vmatpush3.bf16.msra.mxu0 %v1087_v29 }
  0x4e   :  { %979 = vmatprep.subr.bf16.mxu0 %v1088_v30 }
  0x50   :  { %948 = vmatmul.mubr.bf16.gmra.mrb[4].mxu0 %v55_v25 }
  0x51   :  { %980 = vmatpush3.bf16.msra.mxu0 %v1088_v30 }
  0x52   :  { %981 = vmatprep.subr.bf16.mxu0 %v1089_v31 }
  0x55   :  { %982 = vmatpush3.bf16.msra.mxu0 %v1089_v31 }
  0x56   :  { %983 = vmatprep.subr.bf16.mxu0 %v1090_v32 }
  0x59   :  { %984 = vmatpush3.bf16.msra.mxu0 %v1090_v32 }
  0x5a   :  { %985 = vmatprep.subr.bf16.mxu0 %v1091_v33 }
  0x5d   :  { %986 = vmatpush3.bf16.msra.mxu0 %v1091_v33 }
  0x5e   :  { %987 = vmatprep.subr.bf16.mxu0 %v1092_v63 }
  0x61   :  { %988 = vmatpush3.bf16.msra.mxu0 %v1092_v63 }
  0x62   :  { %989 = vmatprep.subr.bf16.mxu0 %v1093_v0 }
  0x65   :  { %990 = vmatpush3.bf16.msra.mxu0 %v1093_v0 }
 0x11b   :  { %v945_v35 = vpop.f32.mrb[0].mxu0 }
 0x11c   :  { %v170_v36 = vadd.f32 %v945_v35, %v818_v34  ;;  %v161_v37 = vpop.f32.mrb[1].mxu0 }
 0x11d   :  { %v162_v38 = vadd.f32 %v818_v34, %v161_v37  ;;  %v946_v39 = vpop.f32.mrb[2].mxu0  ;;  %v1101_v37 = vld [vmem:[#allocation5 + $0xf8] sm:$0xff]  }
 0x11e   :  { %v173_v40 = vadd.f32 %v946_v39, %v818_v34  ;;  %v164_v41 = vpop.f32.mrb[3].mxu0  ;;  %v194_v43 = vmax.f32 %v170_v36, 0.0  ;;  %v1100_v36 = vld [vmem:[#allocation5 + $0xf0] sm:$0xff]   ;;  %v1103_v39 = vld [vmem:[#allocation5 + $0x108] sm:$0xff]  }
 0x11f   :  { %v165_v42 = vadd.f32 %v818_v34, %v164_v41  ;;  %v192_v45 = vmax.f32 %v162_v38, 0.0  ;;  %v1102_v38 = vld [vmem:[#allocation5 + $0x100] sm:$0xff]   ;;  %v1105_v41 = vld [vmem:[#allocation5 + $0x118] sm:$0xff]  }
 0x120   :  { %v195_v44 = vmax.f32 %v173_v40, 0.0  ;;  %1023 = vmatprep.subr.bf16.mxu0 %v1102_v38  ;;  %v1104_v40 = vld [vmem:[#allocation5 + $0x110] sm:$0xff]  }
 0x121   :  { %v193_v46 = vmax.f32 %v165_v42, 0.0  ;;  %v1106_v42 = vld [vmem:[#allocation5 + $0x120] sm:$0xff]  }
 0x122   :  { %v201_v47 = vpack.c.bf16 %v195_v44, %v194_v43  ;;  %v1107_v43 = vld [vmem:[#allocation5 + $0x128] sm:$0xff]   ;;  %v838_v44 = vld [vmem:[%s1268_s2 + $0x2] ss:$0 sm:$0xff] }
 0x123   :  { %v949_v48 = vpop.f32.mrb[4].mxu0  ;;  %v200_v49 = vpack.c.bf16 %v193_v46, %v192_v45 }
 0x124   :  { %v186_v50 = vadd.f32 %v949_v48, %v818_v34  ;;  %v177_v51 = vpop.f32.mrb[5].mxu0 }
 0x125   :  { %v178_v52 = vadd.f32 %v818_v34, %v177_v51  ;;  %v950_v53 = vpop.f32.mrb[6].mxu0  ;;  %967 = vmatprep.mubr.bf16.mxu1 %v200_v49 }
 0x126   :  { %v189_v54 = vadd.f32 %v950_v53, %v818_v34  ;;  %v180_v55 = vpop.f32.mrb[7].mxu0  ;;  %968 = vmatmul.mubr.bf16.vlgmr.msra.gmra.mrb[0].mxu1 %v201_v47  ;;  %v198_v57 = vmax.f32 %v186_v50, 0.0 }
 0x127   :  { %v181_v56 = vadd.f32 %v818_v34, %v180_v55  ;;  %v196_v59 = vmax.f32 %v178_v52, 0.0  ;;  %1000 = vmatpush3.bf16.msra.mxu1 %v1094_v1 }
 0x128   :  { %v199_v58 = vmax.f32 %v189_v54, 0.0  ;;  %1001 = vmatprep.subr.bf16.mxu1 %v1095_v2 }
 0x129   :  { %v197_v60 = vmax.f32 %v181_v56, 0.0 }
 0x12a   :  { %v203_v61 = vpack.c.bf16 %v199_v58, %v198_v57 }
 0x12b   :  { %v202_v62 = vpack.c.bf16 %v197_v60, %v196_v59  ;;  %1002 = vmatpush3.bf16.msra.mxu1 %v1095_v2 }
 0x12c   :  { %1003 = vmatprep.subr.bf16.mxu1 %v1096_v3 }
 0x12d   :  { %971 = vmatprep.mubr.bf16.mxu1 %v202_v62 }
 0x12e   :  { %972 = vmatmul.mubr.bf16.gmra.mrb[4].mxu1 %v203_v61 }
 0x12f   :  { %1004 = vmatpush3.bf16.msra.mxu1 %v1096_v3 }
 0x130   :  { %1005 = vmatprep.subr.bf16.mxu1 %v1097_v4 }
 0x133   :  { %1006 = vmatpush3.bf16.msra.mxu1 %v1097_v4 }
 0x134   :  { %1007 = vmatprep.subr.bf16.mxu1 %v1098_v5 }
 0x137   :  { %1008 = vmatpush3.bf16.msra.mxu1 %v1098_v5 }
 0x138   :  { %1009 = vmatprep.subr.bf16.mxu1 %v1099_v6 }
 0x13b   :  { %1010 = vmatpush3.bf16.msra.mxu1 %v1099_v6 }
 0x13c   :  { %1011 = vmatprep.subr.bf16.mxu1 %v1100_v36 }
 0x13f   :  { %1012 = vmatpush3.bf16.msra.mxu1 %v1100_v36 }
 0x140   :  { %1013 = vmatprep.subr.bf16.mxu1 %v1101_v37 }
 0x143   :  { %1014 = vmatpush3.bf16.msra.mxu1 %v1101_v37 }
 0x144   :  { %1047 = vmatprep.subr.bf16.mxu1 %v1102_v38 }
 0x1f9   :  { %v969_v8 = vpop.f32.mrb[0].mxu1 }
 0x1fa   :  { %v320_v9 = vadd.f32 %v969_v8, %v828_v7  ;;  %v311_v10 = vpop.f32.mrb[1].mxu1 }
 0x1fb   :  { %v312_v11 = vadd.f32 %v828_v7, %v311_v10  ;;  %v970_v12 = vpop.f32.mrb[2].mxu1  ;;  %v1109_v10 = vld [vmem:[#allocation5 + $0x138] sm:$0xff]  }
 0x1fc   :  { %v323_v13 = vadd.f32 %v970_v12, %v828_v7  ;;  %v314_v14 = vpop.f32.mrb[3].mxu1  ;;  %v344_v16 = vmax.f32 %v320_v9, 0.0  ;;  %v1108_v9 = vld [vmem:[#allocation5 + $0x130] sm:$0xff]  }
 0x1fd   :  { %v315_v15 = vadd.f32 %v828_v7, %v314_v14  ;;  %v342_v18 = vmax.f32 %v312_v11, 0.0  ;;  %v848_v11 = vld [vmem:[%s1268_s2 + $0x3] ss:$0 sm:$0xff] }
 0x1fe   :  { %v345_v17 = vmax.f32 %v323_v13, 0.0 }
 0x1ff   :  { %v343_v19 = vmax.f32 %v315_v15, 0.0 }
 0x200   :  { %v351_v20 = vpack.c.bf16 %v345_v17, %v344_v16 }
 0x201   :  { %v350_v21 = vpack.c.bf16 %v343_v19, %v342_v18  ;;  %v973_v22 = vpop.f32.mrb[4].mxu1 }
 0x202   :  { %v336_v23 = vadd.f32 %v973_v22, %v828_v7  ;;  %v327_v24 = vpop.f32.mrb[5].mxu1 }
 0x203   :  { %v328_v25 = vadd.f32 %v828_v7, %v327_v24  ;;  %v974_v26 = vpop.f32.mrb[6].mxu1  ;;  %991 = vmatprep.mubr.bf16.mxu0 %v350_v21 }
 0x204   :  { %v339_v27 = vadd.f32 %v974_v26, %v828_v7  ;;  %v330_v28 = vpop.f32.mrb[7].mxu1  ;;  %992 = vmatmul.mubr.bf16.vlgmr.msra.gmra.mrb[8].mxu0 %v351_v20  ;;  %v348_v30 = vmax.f32 %v336_v23, 0.0 }
 0x205   :  { %v331_v29 = vadd.f32 %v828_v7, %v330_v28  ;;  %v346_v32 = vmax.f32 %v328_v25, 0.0  ;;  %1024 = vmatpush3.bf16.msra.mxu0 %v1102_v38 }
 0x206   :  { %v349_v31 = vmax.f32 %v339_v27, 0.0  ;;  %1025 = vmatprep.subr.bf16.mxu0 %v1103_v39 }
 0x207   :  { %v347_v33 = vmax.f32 %v331_v29, 0.0 }
 0x208   :  { %v353_v34 = vpack.c.bf16 %v349_v31, %v348_v30 }
 0x209   :  { %v352_v35 = vpack.c.bf16 %v347_v33, %v346_v32  ;;  %1026 = vmatpush3.bf16.msra.mxu0 %v1103_v39 }
 0x20a   :  { %1027 = vmatprep.subr.bf16.mxu0 %v1104_v40 }
 0x20b   :  { %995 = vmatprep.mubr.bf16.mxu0 %v352_v35 }
 0x20c   :  { %996 = vmatmul.mubr.bf16.gmra.mrb[12].mxu0 %v353_v34 }
 0x20d   :  { %1028 = vmatpush3.bf16.msra.mxu0 %v1104_v40 }
 0x20e   :  { %1029 = vmatprep.subr.bf16.mxu0 %v1105_v41 }
 0x211   :  { %1030 = vmatpush3.bf16.msra.mxu0 %v1105_v41 }
 0x212   :  { %1031 = vmatprep.subr.bf16.mxu0 %v1106_v42 }
 0x215   :  { %1032 = vmatpush3.bf16.msra.mxu0 %v1106_v42 }
 0x216   :  { %1033 = vmatprep.subr.bf16.mxu0 %v1107_v43 }
 0x219   :  { %1034 = vmatpush3.bf16.msra.mxu0 %v1107_v43 }
 0x21a   :  { %1035 = vmatprep.subr.bf16.mxu0 %v1108_v9 }
 0x21d   :  { %1036 = vmatpush3.bf16.msra.mxu0 %v1108_v9 }
 0x21e   :  { %1037 = vmatprep.subr.bf16.mxu0 %v1109_v10 }
 0x221   :  { %1038 = vmatpush3.bf16.msra.mxu0 %v1109_v10 }
 0x2d7   :  { %v993_v45 = vpop.f32.mrb[8].mxu0 }
 0x2d8   :  { %v470_v46 = vadd.f32 %v993_v45, %v838_v44  ;;  %v461_v47 = vpop.f32.mrb[9].mxu0 }
 0x2d9   :  { %v462_v48 = vadd.f32 %v838_v44, %v461_v47  ;;  %v994_v49 = vpop.f32.mrb[10].mxu0 }
 0x2da   :  { %v473_v50 = vadd.f32 %v994_v49, %v838_v44  ;;  %v464_v51 = vpop.f32.mrb[11].mxu0  ;;  %v494_v53 = vmax.f32 %v470_v46, 0.0 }
 0x2db   :  { %v465_v52 = vadd.f32 %v838_v44, %v464_v51  ;;  %v492_v55 = vmax.f32 %v462_v48, 0.0 }
 0x2dc   :  { %v495_v54 = vmax.f32 %v473_v50, 0.0 }
 0x2dd   :  { %v493_v56 = vmax.f32 %v465_v52, 0.0 }
 0x2de   :  { %v501_v57 = vpack.c.bf16 %v495_v54, %v494_v53 }
 0x2df   :  { %v500_v58 = vpack.c.bf16 %v493_v56, %v492_v55  ;;  %v997_v59 = vpop.f32.mrb[12].mxu0 }
 0x2e0   :  { %v486_v60 = vadd.f32 %v997_v59, %v838_v44  ;;  %v477_v61 = vpop.f32.mrb[13].mxu0 }
 0x2e1   :  { %v478_v62 = vadd.f32 %v838_v44, %v477_v61  ;;  %v998_v63 = vpop.f32.mrb[14].mxu0  ;;  %1015 = vmatprep.mubr.bf16.mxu1 %v500_v58 }
 0x2e2   :  { %v489_v0 = vadd.f32 %v998_v63, %v838_v44  ;;  %v480_v1 = vpop.f32.mrb[15].mxu0  ;;  %1016 = vmatmul.mubr.bf16.vlgmr.msra.gmra.mrb[8].mxu1 %v501_v57  ;;  %v498_v3 = vmax.f32 %v486_v60, 0.0 }
 0x2e3   :  { %v481_v2 = vadd.f32 %v838_v44, %v480_v1  ;;  %1055 = vmatpush3.bf16.msra.mxu1 %v1102_v38  ;;  %v496_v5 = vmax.f32 %v478_v62, 0.0 }
 0x2e4   :  { %v499_v4 = vmax.f32 %v489_v0, 0.0  ;;  %1048 = vmatprep.subr.bf16.mxu1 %v1103_v39 }
 0x2e5   :  { %v497_v6 = vmax.f32 %v481_v2, 0.0 }
 0x2e6   :  { %v503_v7 = vpack.c.bf16 %v499_v4, %v498_v3 }
 0x2e7   :  { %v502_v8 = vpack.c.bf16 %v497_v6, %v496_v5  ;;  %1056 = vmatpush3.bf16.msra.mxu1 %v1103_v39 }
 0x2e8   :  { %1049 = vmatprep.subr.bf16.mxu1 %v1104_v40 }
 0x2e9   :  { %1019 = vmatprep.mubr.bf16.mxu1 %v502_v8 }
 0x2ea   :  { %1020 = vmatmul.mubr.bf16.gmra.mrb[12].mxu1 %v503_v7 }
 0x2eb   :  { %1057 = vmatpush3.bf16.msra.mxu1 %v1104_v40  ;;  %v858_v40 = vld [vmem:[%s1268_s2 + $0x4] ss:$0 sm:$0xff]  ;;  %s1154_s2 = scalar_lea.vmem %s806_s24, 1024 }
 0x2ec   :  { %1050 = vmatprep.subr.bf16.mxu1 %v1105_v41  ;;  %p1155_p2 = scmp.ne.s32.totalorder %s806_s24, %s1154_s2  ;;  %p1160_p4 = scmp.lt.s32.totalorder %s1154_s2, %s1154_s2 }
 0x2ee   :  { %p1161_p5 = por %p1160_p4, %p1159_p3 }
 0x2ef   :  { %1058 = vmatpush3.bf16.msra.mxu1 %v1105_v41 }
 0x2f0   :  { %1051 = vmatprep.subr.bf16.mxu1 %v1106_v42  ;;  %p1162_p6 = pnand %p1161_p5, %p1155_p2 }
 0x2f3   :  { %1059 = vmatpush3.bf16.msra.mxu1 %v1106_v42 }
 0x2f4   :  { %1052 = vmatprep.subr.bf16.mxu1 %v1107_v43 }
 0x2f7   :  { %1060 = vmatpush3.bf16.msra.mxu1 %v1107_v43 }
 0x2f8   :  { %1053 = vmatprep.subr.bf16.mxu1 %v1108_v9 }
 0x2fb   :  { %1061 = vmatpush3.bf16.msra.mxu1 %v1108_v9 }
 0x2fc   :  { %1054 = vmatprep.subr.bf16.mxu1 %v1109_v10 }
 0x2ff   :  { %1062 = vmatpush3.bf16.msra.mxu1 %v1109_v10 }
 0x3b5   :  { %v1017_v12 = vpop.f32.mrb[8].mxu1 }
 0x3b6   :  { %v620_v13 = vadd.f32 %v1017_v12, %v848_v11  ;;  %v611_v14 = vpop.f32.mrb[9].mxu1 }
 0x3b7   :  { %v612_v15 = vadd.f32 %v848_v11, %v611_v14  ;;  %v1018_v16 = vpop.f32.mrb[10].mxu1 }
 0x3b8   :  { %v623_v17 = vadd.f32 %v1018_v16, %v848_v11  ;;  %v614_v18 = vpop.f32.mrb[11].mxu1  ;;  %v644_v20 = vmax.f32 %v620_v13, 0.0 }
 0x3b9   :  { %v615_v19 = vadd.f32 %v848_v11, %v614_v18  ;;  %v642_v22 = vmax.f32 %v612_v15, 0.0 }
 0x3ba   :  { %v645_v21 = vmax.f32 %v623_v17, 0.0 }
 0x3bb   :  { %v643_v23 = vmax.f32 %v615_v19, 0.0 }
 0x3bc   :  { %v651_v24 = vpack.c.bf16 %v645_v21, %v644_v20 }
 0x3bd   :  { %v650_v25 = vpack.c.bf16 %v643_v23, %v642_v22  ;;  %v1021_v26 = vpop.f32.mrb[12].mxu1 }
 0x3be   :  { %v636_v27 = vadd.f32 %v1021_v26, %v848_v11  ;;  %v627_v28 = vpop.f32.mrb[13].mxu1 }
 0x3bf   :  { %v628_v29 = vadd.f32 %v848_v11, %v627_v28  ;;  %v1022_v30 = vpop.f32.mrb[14].mxu1  ;;  %1039 = vmatprep.mubr.bf16.mxu0 %v650_v25 }
 0x3c0   :  { %v639_v31 = vadd.f32 %v1022_v30, %v848_v11  ;;  %v630_v32 = vpop.f32.mrb[15].mxu1  ;;  %1040 = vmatmul.mubr.bf16.vlgmr.msra.gmra.mrb[16].mxu0 %v651_v24  ;;  %v648_v34 = vmax.f32 %v636_v27, 0.0 }
 0x3c1   :  { %v631_v33 = vadd.f32 %v848_v11, %v630_v32  ;;  %v646_v36 = vmax.f32 %v628_v29, 0.0 }
 0x3c2   :  { %v649_v35 = vmax.f32 %v639_v31, 0.0 }
 0x3c3   :  { %v647_v37 = vmax.f32 %v631_v33, 0.0 }
 0x3c4   :  { %v653_v38 = vpack.c.bf16 %v649_v35, %v648_v34 }
 0x3c5   :  { %v652_v39 = vpack.c.bf16 %v647_v37, %v646_v36 }
 0x3c7   :  { %1043 = vmatprep.mubr.bf16.mxu1 %v652_v39 }
 0x3c8   :  { %1044 = vmatmul.mubr.bf16.vlgmr.msra.gmra.mrb[16].mxu1 %v653_v38 }
 0x493   :  { %v1041_v41 = vpop.f32.mrb[16].mxu0 }
 0x494   :  { %v770_v42 = vadd.f32 %v1041_v41, %v858_v40  ;;  %v761_v43 = vpop.f32.mrb[17].mxu0 }
 0x495   :  { %v762_v44 = vadd.f32 %v858_v40, %v761_v43  ;;  %v1042_v45 = vpop.f32.mrb[18].mxu0 }
 0x496   :  { %794 = vst [vmem:[#allocation7 + $0x10] sm:$0xff] %v770_v42  ;;  %v773_v46 = vadd.f32 %v1042_v45, %v858_v40  ;;  %v764_v47 = vpop.f32.mrb[19].mxu0 }
 0x497   :  { %792 = vst [vmem:[#allocation7] sm:$0xff] %v762_v44  ;;  %v765_v48 = vadd.f32 %v858_v40, %v764_v47 }
 0x498   :  { %795 = vst [vmem:[#allocation7 + $0x18] sm:$0xff] %v773_v46 }
 0x499   :  { %793 = vst [vmem:[#allocation7 + $0x8] sm:$0xff] %v765_v48 }
 0x49b   :  { %v1045_v49 = vpop.f32.mrb[16].mxu1 }
 0x49c   :  { %v786_v50 = vadd.f32 %v1045_v49, %v858_v40  ;;  %v777_v51 = vpop.f32.mrb[17].mxu1 }
 0x49d   :  { %v778_v52 = vadd.f32 %v858_v40, %v777_v51  ;;  %v1046_v53 = vpop.f32.mrb[18].mxu1 }
 0x49e   :  { %798 = vst [vmem:[#allocation7 + $0x30] sm:$0xff] %v786_v50  ;;  %v789_v54 = vadd.f32 %v1046_v53, %v858_v40  ;;  %v780_v55 = vpop.f32.mrb[19].mxu1 }
 0x49f   :  { %796 = vst [vmem:[#allocation7 + $0x20] sm:$0xff] %v778_v52  ;;  %v781_v56 = vadd.f32 %v858_v40, %v780_v55 }
 0x4a0   :  { %799 = vst [vmem:[#allocation7 + $0x38] sm:$0xff] %v789_v54 }
 0x4a1   :  { %797 = vst [vmem:[#allocation7 + $0x28] sm:$0xff] %v781_v56 }
 0x4a2   :  { %1165 = shalt.err (!%p1162_p6)
}
 0x4a3   :  { %s1166_s27 = scalar_lea.hbm %s1269_s3, 1024 }
 0x4a4   :  { %p1167_p7 = scmp.ne.s32.totalorder %s1269_s3, %s1166_s27  ;;  %p1170_p8 = scmp.lt.u32.totalorder %s1166_s27, %s1269_s3 }
 0x4a6   :  { %p1172_p9 = pnand %p1170_p8, %p1167_p7 }
 0x4a8   :  { %1175 = shalt.err (!%p1172_p9)
}
 0x4a9   :  { %811 = dma.vmem_to_hbm [thread:$0]  %s806_s24, 1024, %s1269_s3, [#allocation4], %s1183_s22, %s1183_s22, %s1184_s23  }
 0x4aa   :  { %1180 = dma.done.wait [#allocation4], 1024  }
 0x4ab   :  { %1181 = vsyncadd [#allocation4], 4294966272 }
 0x4ac   :  { %815 = vsyncpa [#allocation3], 1 }
 0x4ad   :  { %816 = vsyncpa [#allocation6], 1 }
 0x4ae   :  { %817 = vsyncpa [#allocation4], 1 }

</bundles_post_ra>
